<compile_context>
chip_gen: v6e
topology: v6e:2x2x1
jax: 0.10.0
libtpu: 0.0.40
codegen_flags: <defaults>
</compile_context>

<pallas_src>
import functools

import jax
import jax.numpy as jnp
from jax.experimental import pallas as pl
from jax.experimental.pallas import tpu as pltpu

IN_FEATURES = 640
LANE = 128           # lane width of a vreg
SUBLANE_BF16 = 16    # bf16 sublane packing


def _round_up(v, m):
    return (v + m - 1) // m * m


def _linear_kernel(x_ref, w_ref, b_ref, o_ref):
    # Fused matmul + bias: bf16 operands on the MXU, f32 accumulation, f32 bias add.
    acc = jnp.dot(x_ref[...], w_ref[...], preferred_element_type=jnp.float32)
    o_ref[...] = (acc + b_ref[...]).astype(o_ref.dtype)


@functools.partial(jax.jit, static_argnames=("block_b",))
def rna_type_classifier_forward(x, w_t, bias, *, block_b=512):
    """Forward pass of nn.Linear(640, num_class).

    x:    [B, 640]            f32 activations (feature dim last, as in PyTorch)
    w_t:  [640, num_class]    f32 weight, pre-transposed
    bias: [1, num_class]      f32 bias row
    returns [B, num_class]    f32
    """
    B, D = x.shape
    N = w_t.shape[1]

    # Lane-dense class dim and sublane-aligned batch tiling.
    n_pad = _round_up(N, LANE)
    tb = min(block_b, _round_up(B, SUBLANE_BF16))
    b_pad = _round_up(B, tb)

    # Pad + cast operands in the wrapper. Weight/bias padding is zeros so the
    # padded output columns are just `bias_pad` (= 0) and get sliced away.
    x_p = jnp.zeros((b_pad, D), jnp.bfloat16).at[:B, :].set(x.astype(jnp.bfloat16))
    w_p = jnp.zeros((D, n_pad), jnp.bfloat16).at[:, :N].set(w_t.astype(jnp.bfloat16))
    b_p = jnp.zeros((1, n_pad), jnp.float32).at[:, :N].set(bias.astype(jnp.float32))

    grid = (b_pad // tb,)

    cost = pl.CostEstimate(
        flops=2 * b_pad * D * n_pad,
        transcendentals=0,
        bytes_accessed=(x_p.size * 2 + w_p.size * 2 + b_p.size * 4
                        + b_pad * n_pad * 4),
    )

    out = pl.pallas_call(
        _linear_kernel,
        out_shape=jax.ShapeDtypeStruct((b_pad, n_pad), jnp.float32),
        grid=grid,
        in_specs=[
            pl.BlockSpec((tb, D), lambda i: (i, 0)),      # activations: tiled over batch
            pl.BlockSpec((D, n_pad), lambda i: (0, 0)),   # weight: VMEM-resident across steps
            pl.BlockSpec((1, n_pad), lambda i: (0, 0)),   # bias: VMEM-resident across steps
        ],
        out_specs=pl.BlockSpec((tb, n_pad), lambda i: (i, 0)),
        compiler_params=pltpu.CompilerParams(
            dimension_semantics=("parallel",)),
        cost_estimate=cost,
    )(x_p, w_p, b_p)

    return out[:B, :N]


def init_params(key, num_class):
    """Deterministic synthetic parameters matching nn.Linear(640, num_class) shapes."""
    k_w, k_b = jax.random.split(key)
    bound = 1.0 / jnp.sqrt(jnp.float32(IN_FEATURES))
    # PyTorch stores weight as [num_class, 640]; we keep the transposed layout.
    w = jax.random.uniform(k_w, (num_class, IN_FEATURES), jnp.float32, -bound, bound)
    b = jax.random.uniform(k_b, (num_class,), jnp.float32, -bound, bound)
    return w.T, b.reshape(1, num_class)


if __name__ == "__main__":
    num_class = 13
    batch = 8

    key = jax.random.PRNGKey(0)
    k_x, k_p = jax.random.split(key)
    x = jax.random.normal(k_x, (batch, IN_FEATURES), jnp.float32)
    w_t, bias = init_params(k_p, num_class)

    out = rna_type_classifier_forward(x, w_t, bias)
    out = jax.block_until_ready(out)
    assert out.shape == (batch, num_class)

    # Reference with the same bf16 operand cast + f32 accumulation (tight check).
    ref_bf16 = (jnp.dot(x.astype(jnp.bfloat16), w_t.astype(jnp.bfloat16),
                        preferred_element_type=jnp.float32) + bias)
    assert jnp.allclose(out, ref_bf16, atol=1e-3, rtol=1e-3)

    # Reference in full f32 (loose check: bf16 operand rounding only).
    ref_f32 = x @ w_t + bias
    assert jnp.allclose(out, ref_f32, atol=5e-2, rtol=5e-2)

    print("KERNEL_OK")
</pallas_src>

<mosaic_0001>
module attributes {stable_mosaic.version = 11 : i64} {
  func.func @_linear_kernel(%arg0: i32, %arg1: memref<16x640xbf16, #tpu.memory_space<vmem>>, %arg2: memref<640x128xbf16, #tpu.memory_space<vmem>>, %arg3: memref<1x128xf32, #tpu.memory_space<vmem>>, %arg4: memref<16x128xf32, #tpu.memory_space<vmem>>) attributes {dimension_semantics = [#tpu.dimension_semantics<parallel>], iteration_bounds = array<i64: 1>, scalar_prefetch = 0 : i64, scratch_operands = 0 : i64, tpu.core_type = #tpu.core_type<tc>, window_params = [{transform_indices = @transform_0, window_bounds = array<i64: 16, 640>}, {pipeline_mode = #tpu.pipeline_mode<synchronous>, transform_indices = @transform_1, window_bounds = array<i64: 640, 128>}, {pipeline_mode = #tpu.pipeline_mode<synchronous>, transform_indices = @transform_2, window_bounds = array<i64: 1, 128>}, {transform_indices = @transform_3, window_bounds = array<i64: 16, 128>}]} {
    %c0 = arith.constant 0 : index
    %c0_0 = arith.constant 0 : index
    %0 = vector.load %arg1[%c0, %c0_0] : memref<16x640xbf16, #tpu.memory_space<vmem>>, vector<16x640xbf16>
    %c0_1 = arith.constant 0 : index
    %c0_2 = arith.constant 0 : index
    %1 = vector.load %arg2[%c0_1, %c0_2] : memref<640x128xbf16, #tpu.memory_space<vmem>>, vector<640x128xbf16>
    %cst = arith.constant dense<0.000000e+00> : vector<16x128xf32>
    %2 = tpu.matmul %0, %1, %cst {dimension_numbers = #tpu.dot_dimension_numbers<[1], [0], [0], [1], [0, 0, 1, 1], [], []>} : vector<16x640xbf16>, vector<640x128xbf16>, vector<16x128xf32> -> vector<16x128xf32>
    %c0_3 = arith.constant 0 : index
    %c0_4 = arith.constant 0 : index
    %3 = vector.load %arg3[%c0_3, %c0_4] : memref<1x128xf32, #tpu.memory_space<vmem>>, vector<1x128xf32>
    %4 = vector.broadcast %3 : vector<1x128xf32> to vector<16x128xf32>
    %5 = arith.addf %2, %4 : vector<16x128xf32>
    %c0_5 = arith.constant 0 : index
    %c0_6 = arith.constant 0 : index
    %6 = vector.load %arg4[%c0_5, %c0_6] : memref<16x128xf32, #tpu.memory_space<vmem>>, vector<16x128xf32>
    tpu.vector_store %arg4[%c0_5, %c0_6], %5 {strides = array<i32>} : memref<16x128xf32, #tpu.memory_space<vmem>>, vector<16x128xf32>,
    return
  }
  func.func @transform_0(%arg0: i32) -> (i32, i32) {
    %c0_i32 = arith.constant 0 : i32
    %c0_i32_0 = arith.constant 0 : i32
    return %arg0, %c0_i32 : i32, i32
  }
  func.func @transform_1(%arg0: i32) -> (i32, i32) {
    %c0_i32 = arith.constant 0 : i32
    %c0_i32_0 = arith.constant 0 : i32
    %c0_i32_1 = arith.constant 0 : i32
    return %c0_i32, %c0_i32_0 : i32, i32
  }
  func.func @transform_2(%arg0: i32) -> (i32, i32) {
    %c0_i32 = arith.constant 0 : i32
    %c0_i32_0 = arith.constant 0 : i32
    %c0_i32_1 = arith.constant 0 : i32
    return %c0_i32, %c0_i32_0 : i32, i32
  }
  func.func @transform_3(%arg0: i32) -> (i32, i32) {
    %c0_i32 = arith.constant 0 : i32
    %c0_i32_0 = arith.constant 0 : i32
    return %arg0, %c0_i32 : i32, i32
  }
}

</mosaic_0001>

<bundles_post_ra>
// kernel: rna_type_classifier_forward.1
= control target key start
LH: loop header
LB: loop body
LE: loop exit
PB: predicated region body
PF: predicated region fallthrough
CT: control target
= control target key end

     0   :  { %v671_v33 = vmov 0.0   ;;  %vm672_vm0 = vmmov 0   ;;  %s837_s1 = inlined_call_operand.vmem [shape: bf16[640,128], index: 1, kind: input, shape index: {}]   ;;  %s838_s0 = inlined_call_operand.vmem [shape: bf16[16,640], index: 0, kind: input, shape index: {}]   ;;  %s839_s2 = inlined_call_operand.vmem [shape: f32[1,128], index: 2, kind: input, shape index: {}]   ;;  %s840_s3 = inlined_call_operand.vmem [shape: f32[16,128], index: 3, kind: output, shape index: {}]  }
   0x1   :  { %v624_v0 = vld [vmem:[%s837_s1 + $0x78] sm:$0xff]   ;;  %v628_v4 = vld [vmem:[%s837_s1 + $0x70] sm:$0xff]   ;;  %v632_v8 = vld [vmem:[%s837_s1 + $0x68] sm:$0xff]  }
   0x2   :  { %v625_v1 = vld [vmem:[%s837_s1 + $0x38] sm:$0xff]   ;;  %549 = vmatprep.subr.bf16.mxu0 %v624_v0  ;;  %v629_v5 = vld [vmem:[%s837_s1 + $0x30] sm:$0xff]   ;;  %v633_v9 = vld [vmem:[%s837_s1 + $0x28] sm:$0xff]  }
   0x3   :  { %v626_v2 = vld [vmem:[%s837_s1 + $0xf8] sm:$0xff]   ;;  %550 = vmatpush3.bf16.msra.mxu0 %v625_v1  ;;  %v630_v6 = vld [vmem:[%s837_s1 + $0xf0] sm:$0xff]   ;;  %v634_v10 = vld [vmem:[%s837_s1 + $0xe8] sm:$0xff]  }
   0x4   :  { %v627_v3 = vld [vmem:[%s837_s1 + $0xb8] sm:$0xff]   ;;  %571 = vmatprep.subr.bf16.mxu1 %v626_v2  ;;  %551 = vmatprep.subr.bf16.mxu0 %v628_v4  ;;  %v631_v7 = vld [vmem:[%s837_s1 + $0xb0] sm:$0xff]   ;;  %v635_v11 = vld [vmem:[%s837_s1 + $0xa8] sm:$0xff]  }
   0x5   :  { %572 = vmatpush3.bf16.msra.mxu1 %v627_v3  ;;  %v636_v12 = vld [vmem:[%s837_s1 + $0x60] sm:$0xff]   ;;  %v640_v16 = vld [vmem:[%s837_s1 + $0x58] sm:$0xff]   ;;  %v644_v20 = vld [vmem:[%s837_s1 + $0x50] sm:$0xff]  }
   0x6   :  { %573 = vmatprep.subr.bf16.mxu1 %v630_v6  ;;  %v637_v13 = vld [vmem:[%s837_s1 + $0x20] sm:$0xff]   ;;  %v641_v17 = vld [vmem:[%s837_s1 + $0x18] sm:$0xff]   ;;  %v645_v21 = vld [vmem:[%s837_s1 + $0x10] sm:$0xff]  }
   0x7   :  { %552 = vmatpush3.bf16.msra.mxu0 %v629_v5  ;;  %v638_v14 = vld [vmem:[%s837_s1 + $0xe0] sm:$0xff]   ;;  %v642_v18 = vld [vmem:[%s837_s1 + $0xd8] sm:$0xff]   ;;  %v646_v22 = vld [vmem:[%s837_s1 + $0xd0] sm:$0xff]  }
   0x8   :  { %553 = vmatprep.subr.bf16.mxu0 %v632_v8  ;;  %v639_v15 = vld [vmem:[%s837_s1 + $0xa0] sm:$0xff]   ;;  %v643_v19 = vld [vmem:[%s837_s1 + $0x98] sm:$0xff]   ;;  %v647_v23 = vld [vmem:[%s837_s1 + $0x90] sm:$0xff]  }
   0x9   :  { %574 = vmatpush3.bf16.msra.mxu1 %v631_v7  ;;  %v648_v24 = vld [vmem:[%s837_s1 + $0x48] sm:$0xff]   ;;  %v652_v28 = vld [vmem:[%s837_s1 + $0x40] sm:$0xff]   ;;  %v662_v37 = vld [vmem:[%s837_s1 + $0x138] sm:$0xff]  }
   0xa   :  { %575 = vmatprep.subr.bf16.mxu1 %v634_v10  ;;  %v649_v25 = vld [vmem:[%s837_s1 + $0x8] sm:$0xff]   ;;  %v653_v29 = vld [vmem:[%s837_s1] sm:$0xff]   ;;  %v663_v38 = vld [vmem:[%s837_s1 + $0x130] sm:$0xff]  }
   0xb   :  { %554 = vmatpush3.bf16.msra.mxu0 %v633_v9  ;;  %v650_v26 = vld [vmem:[%s837_s1 + $0xc8] sm:$0xff]   ;;  %v654_v30 = vld [vmem:[%s837_s1 + $0xc0] sm:$0xff]   ;;  %v666_v41 = vld [vmem:[%s837_s1 + $0x118] sm:$0xff]  }
   0xc   :  { %555 = vmatprep.subr.bf16.mxu0 %v636_v12  ;;  %v651_v27 = vld [vmem:[%s837_s1 + $0x88] sm:$0xff]   ;;  %v655_v31 = vld [vmem:[%s838_s0] ss:$20 sps:$4 sm:$0xff]   ;;  %v657_v32 = vld [vmem:[%s838_s0 + $0x4] ss:$20 sps:$4 sm:$0xff]  }
   0xd   :  { %576 = vmatpush3.bf16.msra.mxu1 %v635_v11  ;;  %v658_v34 = vld [vmem:[%s837_s1 + $0x80] sm:$0xff]   ;;  %406 = vmatprep.mubr.bf16.mxu0 %v657_v32  ;;  %v659_v35 = vld [vmem:[%s838_s0 + $0x8] ss:$20 sps:$4 sm:$0xff]   ;;  %v667_v42 = vld [vmem:[%s837_s1 + $0x110] sm:$0xff]  }
   0xe   :  { %577 = vmatprep.subr.bf16.mxu1 %v638_v14  ;;  %v661_v36 = vld [vmem:[%s838_s0 + $0xc] ss:$20 sps:$4 sm:$0xff]   ;;  %v670_v45 = vld [vmem:[%s838_s0 + $0x10] ss:$20 sps:$4 sm:$0xff]  }
   0xf   :  { %556 = vmatpush3.bf16.msra.mxu0 %v637_v13  ;;  %447 = vmatprep.mubr.bf16.mxu1 %v661_v36  ;;  %v664_v39 = vld [vmem:[%s837_s1 + $0x128] sm:$0xff]   ;;  %v665_v40 = vld [vmem:[%s837_s1 + $0x120] sm:$0xff]  }
  0x10   :  { %557 = vmatprep.subr.bf16.mxu0 %v640_v16  ;;  %v668_v43 = vld [vmem:[%s837_s1 + $0x108] sm:$0xff]   ;;  %v669_v44 = vld [vmem:[%s837_s1 + $0x100] sm:$0xff]  }
  0x11   :  { %578 = vmatpush3.bf16.msra.mxu1 %v639_v15  ;;  %v503_v52 = vld [vmem:[%s839_s2] ss:$0 sm:$0xff] }
  0x12   :  { %579 = vmatprep.subr.bf16.mxu1 %v642_v18 }
  0x13   :  { %558 = vmatpush3.bf16.msra.mxu0 %v641_v17 }
  0x14   :  { %559 = vmatprep.subr.bf16.mxu0 %v644_v20 }
  0x15   :  { %580 = vmatpush3.bf16.msra.mxu1 %v643_v19 }
  0x16   :  { %581 = vmatprep.subr.bf16.mxu1 %v646_v22 }
  0x17   :  { %560 = vmatpush3.bf16.msra.mxu0 %v645_v21 }
  0x18   :  { %561 = vmatprep.subr.bf16.mxu0 %v648_v24 }
  0x19   :  { %582 = vmatpush3.bf16.msra.mxu1 %v647_v23 }
  0x1a   :  { %583 = vmatprep.subr.bf16.mxu1 %v650_v26 }
  0x1b   :  { %562 = vmatpush3.bf16.msra.mxu0 %v649_v25 }
  0x1c   :  { %563 = vmatprep.subr.bf16.mxu0 %v652_v28 }
  0x1d   :  { %584 = vmatpush3.bf16.msra.mxu1 %v651_v27 }
  0x1e   :  { %585 = vmatprep.subr.bf16.mxu1 %v654_v30 }
  0x1f   :  { %564 = vmatpush3.bf16.msra.mxu0 %v653_v29 }
  0x20   :  { %602 = vmatprep.subr.bf16.mxu0 %v671_v33 }
  0x21   :  { %586 = vmatpush3.bf16.msra.mxu1 %v658_v34 }
  0x22   :  { %407 = vmatmul.mubr.bf16.vlgmr.msra.gmra.mxu0 %v655_v31 }
  0x23   :  { %618 = vmatprep.mubr.msk.bf16.mxu0 %vm672_vm0, %v671_v33  ;;  %603 = vmatpush3.bf16.msra.mxu0 %v662_v37 }
  0x24   :  { %448 = vmatmul.mubr.bf16.vlgmr.msra.gmra.mxu1 %v659_v35  ;;  %604 = vmatprep.subr.bf16.mxu0 %v671_v33 }
  0x27   :  { %605 = vmatpush3.bf16.msra.mxu0 %v663_v38 }
  0x28   :  { %606 = vmatprep.subr.bf16.mxu0 %v671_v33 }
  0x2b   :  { %607 = vmatpush3.bf16.msra.mxu0 %v664_v39 }
  0x2c   :  { %608 = vmatprep.subr.bf16.mxu0 %v671_v33 }
  0x2f   :  { %609 = vmatpush3.bf16.msra.mxu0 %v665_v40 }
  0x30   :  { %610 = vmatprep.subr.bf16.mxu0 %v671_v33 }
  0x33   :  { %611 = vmatpush3.bf16.msra.mxu0 %v666_v41 }
  0x34   :  { %612 = vmatprep.subr.bf16.mxu0 %v671_v33 }
  0x37   :  { %613 = vmatpush3.bf16.msra.mxu0 %v667_v42 }
  0x38   :  { %614 = vmatprep.subr.bf16.mxu0 %v671_v33 }
  0x3b   :  { %615 = vmatpush3.bf16.msra.mxu0 %v668_v43 }
  0x3c   :  { %616 = vmatprep.subr.bf16.mxu0 %v671_v33 }
  0x3f   :  { %617 = vmatpush3.bf16.msra.mxu0 %v669_v44 }
  0x42   :  { %619 = vmatmul.mubr.bf16.vlgmr.msra.gmra.mxu0 %v670_v45 }
  0xe2   :  { %v565_v46 = vpop.f32.mrf.mxu0 }
  0xe4   :  { %v566_v47 = vpop.f32.mrf.mxu0  ;;  %v587_v48 = vpop.f32.mrf.mxu1 }
  0xe5   :  { %v567_v51 = vadd.f32 %v566_v47, %v565_v46 }
  0xe6   :  { %v568_v49 = vpop.f32.mrf.mxu0  ;;  %v588_v50 = vpop.f32.mrf.mxu1 }
  0xe7   :  { %v409_v55 = vadd.f32 %v567_v51, %v503_v52  ;;  %v589_v56 = vadd.f32 %v588_v50, %v587_v48 }
  0xe8   :  { %v569_v53 = vpop.f32.mrf.mxu0  ;;  %v590_v54 = vpop.f32.mrf.mxu1 }
  0xe9   :  { %v570_v57 = vadd.f32 %v569_v53, %v568_v49  ;;  %v450_v61 = vadd.f32 %v589_v56, %v409_v55 }
  0xea   :  { %v591_v58 = vpop.f32.mrf.mxu1 }
  0xeb   :  { %v412_v59 = vadd.f32 %v570_v57, %v503_v52  ;;  %v592_v60 = vadd.f32 %v591_v58, %v590_v54 }
  0xed   :  { %v453_v1 = vadd.f32 %v592_v60, %v412_v59 }
 0x102   :  { %v490_v62 = vpop.f32.mrf.mxu0 }
 0x103   :  { %v491_v63 = vadd.f32 %v490_v62, %v450_v61 }
 0x104   :  { %v620_v0 = vpop.f32.mrf.mxu0 }
 0x105   :  { %497 = vst [vmem:[%s840_s3] sm:$0xff] %v491_v63 }
 0x106   :  { %v493_v2 = vpop.f32.mrf.mxu0 }
 0x107   :  { %v494_v3 = vadd.f32 %v493_v2, %v453_v1 }
 0x108   :  { %v621_v4 = vpop.f32.mrf.mxu0 }
 0x109   :  { %498 = vst [vmem:[%s840_s3 + $0x8] sm:$0xff] %v494_v3 }

</bundles_post_ra>
